<compile_context>
chip_gen: v5e
topology: v5e:2x2
jax: 0.10.0
libtpu: 0.0.40
codegen_flags: <defaults>
</compile_context>

<pallas_src>
import functools

import jax
import jax.numpy as jnp
from jax.experimental import pallas as pl
from jax.experimental.pallas import tpu as pltpu


def policy_kernel(xT_ref, w1_ref, b1_ref, wh_ref, bh_ref, out_ref):
    # xT_ref : [4, TB]   bf16  (features on sublanes, batch on lanes)
    # w1_ref : [128, 4]  bf16   b1_ref : [128, 1] f32
    # wh_ref : [8, 128]  bf16   bh_ref : [8, 1]   f32
    # out_ref: [8, TB]   f32   (rows 0-1 probs, row 2 value, rows 3-7 zero)

    # ---- affine1 + ReLU: h = relu(W1 @ x^T + b1) -> [128, TB] (f32 acc) ----
    h = jnp.dot(w1_ref[...], xT_ref[...], preferred_element_type=jnp.float32)
    h = jnp.maximum(h + b1_ref[...], 0.0)

    # ---- fused heads: [8,128] @ [128,TB] -> [8, TB], one MXU matmul ----
    heads = jnp.dot(wh_ref[...], h.astype(jnp.bfloat16),
                    preferred_element_type=jnp.float32)
    heads = heads + bh_ref[...]

    # ---- softmax over the 2 action rows (elementwise, no cross-lane ops) ----
    s0 = heads[0:1, :]                     # [1, TB]
    s1 = heads[1:2, :]                     # [1, TB]
    m = jnp.maximum(s0, s1)
    e0 = jnp.exp(s0 - m)
    e1 = jnp.exp(s1 - m)
    inv = pl.reciprocal(e0 + e1)           # exact: probs sum to 1

    # ---- single dense [8, TB] output slab ----
    out_ref[0:1, :] = e0 * inv             # P(action 0)
    out_ref[1:2, :] = e1 * inv             # P(action 1)
    out_ref[2:8, :] = heads[2:8, :]        # row 2 = value, rows 3-7 = zeros


def _round_up(n, m):
    return ((n + m - 1) // m) * m


@functools.partial(jax.jit, static_argnums=(2,))
def _policy_forward_jit(x, params, block_b):
    B = x.shape[0]
    # Auto-size the batch tile: never pad a tiny batch up to block_b.
    tb = min(block_b, max(128, _round_up(B, 128)))
    b_pad = _round_up(B, tb)

    # Batch-on-lanes input [4, b_pad]: one fused transpose + pad + bf16 cast.
    xT = jnp.pad(x.T.astype(jnp.bfloat16), ((0, 0), (0, b_pad - B)))

    out = pl.pallas_call(
        policy_kernel,
        out_shape=jax.ShapeDtypeStruct((8, b_pad), jnp.float32),
        grid_spec=pltpu.PrefetchScalarGridSpec(
            num_scalar_prefetch=0,
            grid=(b_pad // tb,),
            in_specs=[
                pl.BlockSpec((4, tb), lambda i: (0, i)),     # x^T batch tile
                pl.BlockSpec((128, 4), lambda i: (0, 0)),    # W1 (resident)
                pl.BlockSpec((128, 1), lambda i: (0, 0)),    # b1
                pl.BlockSpec((8, 128), lambda i: (0, 0)),    # fused head W
                pl.BlockSpec((8, 1), lambda i: (0, 0)),      # fused head b
            ],
            out_specs=pl.BlockSpec((8, tb), lambda i: (0, i)),
        ),
        compiler_params=pltpu.CompilerParams(
            dimension_semantics=("parallel",),   # v7x: shard tiles on 2 TCs
        ),
    )(xT, params["w1"], params["b1"], params["wh"], params["bh"])

    probs = out[0:2, :B].T        # [B, 2]
    values = out[2:3, :B].T       # [B, 1]
    return probs, values


def policy_forward(x, params, block_b=2048):
    """x: [B, 4] float32. Returns (probs [B, 2], values [B, 1])."""
    return _policy_forward_jit(x, params, block_b)


def init_params(key):
    """Deterministic synthetic parameters with the module's shapes.

    Returns (kernel_params, ref_params). Kernel weights are kept in PyTorch's
    [out, in] layout (exactly what W @ x^T wants), the two heads are packed
    into one [8, 128] weight / [8, 1] bias (rows 0-1 action, row 2 value,
    rows 3-7 zero), and the matmul operands are pre-cast to bf16."""
    k1, k2, k3, k4, k5, k6 = jax.random.split(key, 6)

    def linear(kw, kb, fan_in, fan_out):
        bound = 1.0 / jnp.sqrt(jnp.float32(fan_in))
        w = jax.random.uniform(kw, (fan_out, fan_in), jnp.float32, -bound, bound)
        b = jax.random.uniform(kb, (fan_out,), jnp.float32, -bound, bound)
        return w, b

    w1, b1 = linear(k1, k2, 4, 128)      # affine1:     Linear(4, 128)
    wa, ba = linear(k3, k4, 128, 2)      # action_head: Linear(128, 2)
    wv, bv = linear(k5, k6, 128, 1)      # value_head:  Linear(128, 1)

    wh = jnp.zeros((8, 128), jnp.float32).at[0:2].set(wa).at[2:3].set(wv)
    bh = jnp.zeros((8,), jnp.float32).at[0:2].set(ba).at[2:3].set(bv)

    kernel_params = {
        "w1": w1.astype(jnp.bfloat16),
        "b1": b1.reshape(128, 1),
        "wh": wh.astype(jnp.bfloat16),
        "bh": bh.reshape(8, 1),
    }
    ref_params = {"w1": w1, "b1": b1, "wa": wa, "ba": ba, "wv": wv, "bv": bv}
    return kernel_params, ref_params


if __name__ == "__main__":
    key = jax.random.PRNGKey(0)
    pkey, xkey = jax.random.split(key)

    kp, rp = init_params(pkey)
    B = 8
    x = jax.random.normal(xkey, (B, 4), dtype=jnp.float32)   # CartPole-like state

    probs, values = policy_forward(x, kp)
    jax.block_until_ready((probs, values))
    assert probs.shape == (B, 2) and values.shape == (B, 1)

    hi = jax.lax.Precision.HIGHEST
    f32 = lambda a: a.astype(jnp.float32)

    # ---- exact f32 reference (module semantics), sanity tolerance ----
    h32 = jnp.maximum(jnp.dot(x, rp["w1"].T, precision=hi) + rp["b1"], 0.0)
    probs32 = jax.nn.softmax(jnp.dot(h32, rp["wa"].T, precision=hi) + rp["ba"], axis=-1)
    values32 = jnp.dot(h32, rp["wv"].T, precision=hi) + rp["bv"]
    assert jnp.allclose(probs, probs32, atol=4e-2, rtol=4e-2)
    assert jnp.allclose(values, values32, atol=7e-2, rtol=7e-2)

    # ---- matched-precision reference (bf16 operands, f32 accumulation) ----
    xb = f32(x.astype(jnp.bfloat16))
    w1b, whb = f32(kp["w1"]), f32(kp["wh"])
    hb = jnp.maximum(jnp.dot(xb, w1b.T, precision=hi) + rp["b1"], 0.0)
    headsb = jnp.dot(f32(hb.astype(jnp.bfloat16)), whb.T, precision=hi) + kp["bh"][:, 0]
    probs_m = jax.nn.softmax(headsb[:, 0:2], axis=-1)
    values_m = headsb[:, 2:3]
    assert jnp.allclose(probs, probs_m, atol=2e-3, rtol=2e-3)
    assert jnp.allclose(values, values_m, atol=2e-3, rtol=2e-3)

    # exact reciprocal -> probabilities sum to 1
    assert jnp.allclose(jnp.sum(probs, axis=-1), 1.0, atol=1e-5)

    print("KERNEL_OK")
</pallas_src>

<mosaic_0001>
module attributes {stable_mosaic.version = 11 : i64} {
  func.func @policy_kernel(%arg0: i32, %arg1: memref<4x128xbf16, #tpu.memory_space<vmem>>, %arg2: memref<128x4xbf16, #tpu.memory_space<vmem>>, %arg3: memref<128x1xf32, #tpu.memory_space<vmem>>, %arg4: memref<8x128xbf16, #tpu.memory_space<vmem>>, %arg5: memref<8x1xf32, #tpu.memory_space<vmem>>, %arg6: memref<8x128xf32, #tpu.memory_space<vmem>>) attributes {dimension_semantics = [#tpu.dimension_semantics<parallel>], iteration_bounds = array<i64: 1>, scalar_prefetch = 0 : i64, scratch_operands = 0 : i64, tpu.core_type = #tpu.core_type<tc>, window_params = [{transform_indices = @transform_0, window_bounds = array<i64: 4, 128>}, {pipeline_mode = #tpu.pipeline_mode<synchronous>, transform_indices = @transform_1, window_bounds = array<i64: 128, 4>}, {pipeline_mode = #tpu.pipeline_mode<synchronous>, transform_indices = @transform_2, window_bounds = array<i64: 128, 1>}, {pipeline_mode = #tpu.pipeline_mode<synchronous>, transform_indices = @transform_3, window_bounds = array<i64: 8, 128>}, {pipeline_mode = #tpu.pipeline_mode<synchronous>, transform_indices = @transform_4, window_bounds = array<i64: 8, 1>}, {transform_indices = @transform_5, window_bounds = array<i64: 8, 128>}]} {
    %c0 = arith.constant 0 : index
    %c0_0 = arith.constant 0 : index
    %0 = vector.load %arg2[%c0, %c0_0] : memref<128x4xbf16, #tpu.memory_space<vmem>>, vector<128x4xbf16>
    %c0_1 = arith.constant 0 : index
    %c0_2 = arith.constant 0 : index
    %1 = vector.load %arg1[%c0_1, %c0_2] : memref<4x128xbf16, #tpu.memory_space<vmem>>, vector<4x128xbf16>
    %cst = arith.constant dense<0.000000e+00> : vector<128x128xf32>
    %2 = tpu.matmul %0, %1, %cst {dimension_numbers = #tpu.dot_dimension_numbers<[1], [0], [0], [1], [0, 0, 1, 1], [], []>} : vector<128x4xbf16>, vector<4x128xbf16>, vector<128x128xf32> -> vector<128x128xf32>
    %c0_3 = arith.constant 0 : index
    %c0_4 = arith.constant 0 : index
    %3 = vector.load %arg3[%c0_3, %c0_4] : memref<128x1xf32, #tpu.memory_space<vmem>>, vector<128x1xf32>
    %4 = vector.broadcast %3 : vector<128x1xf32> to vector<128x128xf32>
    %5 = arith.addf %2, %4 : vector<128x128xf32>
    %cst_5 = arith.constant 0.000000e+00 : f32
    %6 = vector.broadcast %cst_5 : f32 to vector<128x128xf32>
    %7 = arith.maximumf %5, %6 : vector<128x128xf32>
    %c0_6 = arith.constant 0 : index
    %c0_7 = arith.constant 0 : index
    %8 = vector.load %arg4[%c0_6, %c0_7] : memref<8x128xbf16, #tpu.memory_space<vmem>>, vector<8x128xbf16>
    %9 = arith.truncf %7 : vector<128x128xf32> to vector<128x128xbf16>
    %cst_8 = arith.constant dense<0.000000e+00> : vector<8x128xf32>
    %10 = tpu.matmul %8, %9, %cst_8 {dimension_numbers = #tpu.dot_dimension_numbers<[1], [0], [0], [1], [0, 0, 1, 1], [], []>} : vector<8x128xbf16>, vector<128x128xbf16>, vector<8x128xf32> -> vector<8x128xf32>
    %c0_9 = arith.constant 0 : index
    %c0_10 = arith.constant 0 : index
    %11 = vector.load %arg5[%c0_9, %c0_10] : memref<8x1xf32, #tpu.memory_space<vmem>>, vector<8x1xf32>
    %12 = vector.broadcast %11 : vector<8x1xf32> to vector<8x128xf32>
    %13 = arith.addf %10, %12 : vector<8x128xf32>
    %14 = vector.extract_strided_slice %13 {offsets = [0, 0], sizes = [1, 128], strides = [1, 1]} : vector<8x128xf32> to vector<1x128xf32>
    %15 = vector.extract_strided_slice %13 {offsets = [1, 0], sizes = [1, 128], strides = [1, 1]} : vector<8x128xf32> to vector<1x128xf32>
    %16 = arith.maximumf %14, %15 : vector<1x128xf32>
    %17 = arith.subf %14, %16 : vector<1x128xf32>
    %18 = math.exp %17 : vector<1x128xf32>
    %19 = arith.subf %15, %16 : vector<1x128xf32>
    %20 = math.exp %19 : vector<1x128xf32>
    %21 = arith.addf %18, %20 : vector<1x128xf32>
    %22 = tpu.reciprocal %21 : vector<1x128xf32> -> vector<1x128xf32>
    %23 = arith.mulf %18, %22 : vector<1x128xf32>
    %c0_11 = arith.constant 0 : index
    %c0_12 = arith.constant 0 : index
    %24 = vector.load %arg6[%c0_11, %c0_12] : memref<8x128xf32, #tpu.memory_space<vmem>>, vector<1x128xf32>
    tpu.vector_store %arg6[%c0_11, %c0_12], %23 {strides = array<i32>} : memref<8x128xf32, #tpu.memory_space<vmem>>, vector<1x128xf32>,
    %25 = arith.mulf %20, %22 : vector<1x128xf32>
    %c1 = arith.constant 1 : index
    %c0_13 = arith.constant 0 : index
    %26 = vector.load %arg6[%c1, %c0_13] : memref<8x128xf32, #tpu.memory_space<vmem>>, vector<1x128xf32>
    tpu.vector_store %arg6[%c1, %c0_13], %25 {strides = array<i32>} : memref<8x128xf32, #tpu.memory_space<vmem>>, vector<1x128xf32>,
    %27 = vector.extract_strided_slice %13 {offsets = [2, 0], sizes = [6, 128], strides = [1, 1]} : vector<8x128xf32> to vector<6x128xf32>
    %c2 = arith.constant 2 : index
    %c0_14 = arith.constant 0 : index
    %28 = vector.load %arg6[%c2, %c0_14] : memref<8x128xf32, #tpu.memory_space<vmem>>, vector<6x128xf32>
    tpu.vector_store %arg6[%c2, %c0_14], %27 {strides = array<i32>} : memref<8x128xf32, #tpu.memory_space<vmem>>, vector<6x128xf32>,
    return
  }
  func.func @transform_0(%arg0: i32) -> (i32, i32) {
    %c0_i32 = arith.constant 0 : i32
    %c0_i32_0 = arith.constant 0 : i32
    return %c0_i32, %arg0 : i32, i32
  }
  func.func @transform_1(%arg0: i32) -> (i32, i32) {
    %c0_i32 = arith.constant 0 : i32
    %c0_i32_0 = arith.constant 0 : i32
    %c0_i32_1 = arith.constant 0 : i32
    return %c0_i32, %c0_i32_0 : i32, i32
  }
  func.func @transform_2(%arg0: i32) -> (i32, i32) {
    %c0_i32 = arith.constant 0 : i32
    %c0_i32_0 = arith.constant 0 : i32
    %c0_i32_1 = arith.constant 0 : i32
    return %c0_i32, %c0_i32_0 : i32, i32
  }
  func.func @transform_3(%arg0: i32) -> (i32, i32) {
    %c0_i32 = arith.constant 0 : i32
    %c0_i32_0 = arith.constant 0 : i32
    %c0_i32_1 = arith.constant 0 : i32
    return %c0_i32, %c0_i32_0 : i32, i32
  }
  func.func @transform_4(%arg0: i32) -> (i32, i32) {
    %c0_i32 = arith.constant 0 : i32
    %c0_i32_0 = arith.constant 0 : i32
    %c0_i32_1 = arith.constant 0 : i32
    return %c0_i32, %c0_i32_0 : i32, i32
  }
  func.func @transform_5(%arg0: i32) -> (i32, i32) {
    %c0_i32 = arith.constant 0 : i32
    %c0_i32_0 = arith.constant 0 : i32
    return %c0_i32, %arg0 : i32, i32
  }
}

</mosaic_0001>

<bundles_post_ra>
// kernel: _policy_forward_jit.1
= control target key start
LH: loop header
LB: loop body
LE: loop exit
PB: predicated region body
PF: predicated region fallthrough
CT: control target
= control target key end

     0   :  { %vm199_vm0 = vcmask 1041408   ;;  %v399_v0 = vmov 0   ;;  %vm174_vm1 = vcmask 31744   ;;  %s534_s2 = inlined_call_operand.vmem [shape: f32[128,1], index: 2, kind: input, shape index: {}]   ;;  %s535_s0 = inlined_call_operand.vmem [shape: bf16[4,128], index: 0, kind: input, shape index: {}]   ;;  %s536_s1 = inlined_call_operand.vmem [shape: bf16[128,4], index: 1, kind: input, shape index: {}]   ;;  %s537_s4 = inlined_call_operand.vmem [shape: f32[8,1], index: 4, kind: input, shape index: {}]   ;;  %s538_s3 = inlined_call_operand.vmem [shape: bf16[8,128], index: 3, kind: input, shape index: {}]   ;;  %s539_s5 = inlined_call_operand.vmem [shape: f32[8,128], index: 5, kind: output, shape index: {}]  }
   0x1   :  { %390 = vset.pattern.permute.xlu0 %v399_v0  ;;  %v52_v1 = vld [vmem:[%s534_s2 + $0x70] sm:$0xff]  ;;  %v37_v2 = vld [vmem:[%s535_s0] sm:$0x3]  ;;  %391 = vset.pattern.permute.xlu1 %v399_v0  ;;  %v382_v5 = vld [vmem:[%s536_s1 + $0x18] sm:$0xff] }
   0x2   :  { %126 = vperm.xlu0 %390, %v52_v1   ;;  %v201_v3 = vsel %vm199_vm0, %v37_v2, 0  ;;  %v379_v4 = vld [vmem:[%s536_s1] sm:$0xff]  ;;  %392 = vset.pattern.permute.xlu2 %v399_v0  ;;  %v385_v7 = vld [vmem:[%s536_s1 + $0x30] sm:$0xff]  ;;  %v53_v9 = vld [vmem:[%s534_s2 + $0x78] sm:$0xff] }
   0x3   :  { %v50_v6 = vld [vmem:[%s534_s2 + $0x60] sm:$0xff]  ;;  %210 = vmatpush.bf16.msra.mxu0 %v201_v3  ;;  %387 = vmatpush.bf16.msra.mxu2 %v201_v3  ;;  %v48_v8 = vld [vmem:[%s534_s2 + $0x50] sm:$0xff]  ;;  %v51_v10 = vld [vmem:[%s534_s2 + $0x68] sm:$0xff] }
   0x4   :  { %388 = vmatpush.bf16.msra.mxu3 %v201_v3  ;;  %116 = vperm.xlu1 %391, %v50_v6   ;;  %v49_v11 = vld [vmem:[%s534_s2 + $0x58] sm:$0xff]  ;;  %v46_v12 = vld [vmem:[%s534_s2 + $0x40] sm:$0xff]  ;;  %v47_v13 = vld [vmem:[%s534_s2 + $0x48] sm:$0xff] }
   0x5   :  { %106 = vperm.xlu2 %392, %v48_v8   ;;  %v380_v14 = vld [vmem:[%s536_s1 + $0x8] sm:$0xff]  ;;  %v383_v15 = vld [vmem:[%s536_s1 + $0x20] sm:$0xff]  ;;  %v386_v16 = vld [vmem:[%s536_s1 + $0x38] sm:$0xff] }
   0x6   :  { %371 = vmatmul.msk.bf16.vlgmr.msra.gmra.mxu0 %vm174_vm1, %v379_v4  ;;  %374 = vmatmul.msk.bf16.vlgmr.msra.gmra.mxu2 %vm174_vm1, %v382_v5  ;;  %v44_v17 = vld [vmem:[%s534_s2 + $0x30] sm:$0xff]  ;;  %v45_v18 = vld [vmem:[%s534_s2 + $0x38] sm:$0xff]  ;;  %v42_v19 = vld [vmem:[%s534_s2 + $0x20] sm:$0xff] }
   0x7   :  { %377 = vmatmul.msk.bf16.vlgmr.msra.gmra.mxu3 %vm174_vm1, %v385_v7  ;;  %v43_v20 = vld [vmem:[%s534_s2 + $0x28] sm:$0xff]  ;;  %v40_v21 = vld [vmem:[%s534_s2 + $0x10] sm:$0xff]  ;;  %v41_v22 = vld [vmem:[%s534_s2 + $0x18] sm:$0xff] }
   0x8   :  { %v381_v23 = vld [vmem:[%s536_s1 + $0x10] sm:$0xff]  ;;  %v384_v24 = vld [vmem:[%s536_s1 + $0x28] sm:$0xff]  ;;  %v38_v25 = vld [vmem:[%s534_s2] sm:$0xff] }
   0x9   :  { %v39_v26 = vld [vmem:[%s534_s2 + $0x8] sm:$0xff]  ;;  %v277_v27 = vld [vmem:[%s537_s4] sm:$0xff] }
   0xa   :  { %131 = vperm.xlu0 %390, %v53_v9  }
   0xc   :  { %121 = vperm.xlu1 %391, %v51_v10  }
   0xd   :  { %111 = vperm.xlu2 %392, %v49_v11  }
  0x12   :  { %96 = vperm.xlu0 %390, %v46_v12  }
  0x14   :  { %101 = vperm.xlu1 %391, %v47_v13  }
  0x15   :  { %86 = vperm.xlu2 %392, %v44_v17  }
  0x16   :  { %372 = vmatmul.msk.bf16.gmra.mxu0 %vm174_vm1, %v380_v14  ;;  %375 = vmatmul.msk.bf16.gmra.mxu2 %vm174_vm1, %v383_v15 }
  0x17   :  { %378 = vmatmul.msk.bf16.gmra.mxu3 %vm174_vm1, %v386_v16 }
  0x1a   :  { %91 = vperm.xlu0 %390, %v45_v18  }
  0x1c   :  { %76 = vperm.xlu1 %391, %v42_v19  }
  0x1d   :  { %81 = vperm.xlu2 %392, %v43_v20  }
  0x22   :  { %66 = vperm.xlu0 %390, %v40_v21  }
  0x24   :  { %71 = vperm.xlu1 %391, %v41_v22  }
  0x25   :  { %56 = vperm.xlu2 %392, %v38_v25  }
  0x26   :  { %373 = vmatmul.msk.bf16.gmra.mxu0 %vm174_vm1, %v381_v23  ;;  %376 = vmatmul.msk.bf16.gmra.mxu2 %vm174_vm1, %v384_v24 }
  0x2a   :  { %61 = vperm.xlu0 %390, %v39_v26  }
  0x2c   :  { %280 = vperm.xlu1 %391, %v277_v27  }
  0x5f   :  { %v107_v37 = vpop.permute.xlu2 %106 }
  0x67   :  { %v112_v46 = vpop.permute.xlu2 %111 }
  0x6f   :  { %v87_v60 = vpop.permute.xlu2 %86 }
  0x74   :  { %v127_v31 = vpop.permute.xlu0 %126 }
  0x76   :  { %v117_v35 = vpop.permute.xlu1 %116 }
  0x77   :  { %v82_v10 = vpop.permute.xlu2 %81 }
  0x7c   :  { %v132_v36 = vpop.permute.xlu0 %131 }
  0x7e   :  { %v122_v41 = vpop.permute.xlu1 %121 }
  0x7f   :  { %v57_v26 = vpop.permute.xlu2 %56 }
  0x83   :  { %v516_v28 = vpop.f32.mrf.mxu0 }
  0x84   :  { %v97_v42 = vpop.permute.xlu0 %96 }
  0x86   :  { %v102_v56 = vpop.permute.xlu1 %101 }
  0x89   :  { %v227_v29 = vpop.f32.mrf.mxu2 }
  0x8a   :  { %v242_v30 = vpop.f32.mrf.mxu3  ;;  %v228_v12 = vadd.f32 %v227_v29, %v87_v60 }
  0x8b   :  { %v518_v32 = vpop.f32.mrf.mxu0  ;;  %v243_v47 = vadd.f32 %v242_v30, %v117_v35 }
  0x8c   :  { %v92_v58 = vpop.permute.xlu0 %91  ;;  %v258_v17 = vmax.f32 %v228_v12, 0.0 }
  0x8d   :  { %v264_v53 = vmax.f32 %v243_v47, 0.0 }
  0x8e   :  { %v77_v2 = vpop.permute.xlu1 %76 }
  0x91   :  { %v229_v33 = vpop.f32.mrf.mxu2 }
  0x92   :  { %v244_v34 = vpop.f32.mrf.mxu3  ;;  %v230_v7 = vadd.f32 %v229_v33, %v92_v58  ;;  %v213_v33 = vadd.f32 %v516_v28, %v57_v26 }
  0x93   :  { %v217_v38 = vpop.f32.mrf.mxu0  ;;  %v245_v48 = vadd.f32 %v244_v34, %v122_v41 }
  0x94   :  { %v67_v6 = vpop.permute.xlu0 %66  ;;  %v259_v14 = vmax.f32 %v230_v7, 0.0 }
  0x95   :  { %v265_v54 = vmax.f32 %v245_v48, 0.0  ;;  %v218_v20 = vadd.f32 %v217_v38, %v67_v6  ;;  %v268_v38 = vld [vmem:[%s538_s3] sm:$0xf] }
  0x96   :  { %v72_v19 = vpop.permute.xlu1 %71  ;;  %v272_v23 = vpack.c.bf16 %v259_v14, %v258_v17 }
  0x97   :  { %v275_v59 = vpack.c.bf16 %v265_v54, %v264_v53  ;;  %v254_v27 = vmax.f32 %v218_v20, 0.0 }
  0x99   :  { %v232_v39 = vpop.f32.mrf.mxu2 }
  0x9a   :  { %v247_v40 = vpop.f32.mrf.mxu3  ;;  %v233_v3 = vadd.f32 %v232_v39, %v97_v42 }
  0x9b   :  { %v248_v43 = vadd.f32 %v247_v40, %v127_v31  ;;  %v219_v49 = vpop.f32.mrf.mxu0 }
  0x9c   :  { %v260_v13 = vmax.f32 %v233_v3, 0.0  ;;  %v220_v21 = vadd.f32 %v219_v49, %v72_v19  ;;  %v62_v24 = vpop.permute.xlu0 %61 }
  0x9d   :  { %v266_v51 = vmax.f32 %v248_v43, 0.0  ;;  %v215_v29 = vadd.f32 %v518_v32, %v62_v24 }
  0x9e   :  { %v255_v30 = vmax.f32 %v220_v21, 0.0  ;;  %v281_v39 = vpop.permute.xlu1 %280 }
  0x9f   :  { %v253_v34 = vmax.f32 %v215_v29, 0.0 }
  0xa0   :  { %v270_v35 = vpack.c.bf16 %v255_v30, %v254_v27 }
  0xa1   :  { %v234_v44 = vpop.f32.mrf.mxu2 }
  0xa2   :  { %v249_v45 = vpop.f32.mrf.mxu3  ;;  %v235_v0 = vadd.f32 %v234_v44, %v102_v56 }
  0xa3   :  { %v250_v50 = vadd.f32 %v249_v45, %v132_v36  ;;  %v222_v61 = vpop.f32.mrf.mxu0  ;;  %v252_v36 = vmax.f32 %v213_v33, 0.0 }
  0xa4   :  { %v261_v8 = vmax.f32 %v235_v0, 0.0  ;;  %v223_v18 = vadd.f32 %v222_v61, %v77_v2 }
  0xa5   :  { %v267_v52 = vmax.f32 %v250_v50, 0.0 }
  0xa6   :  { %v273_v16 = vpack.c.bf16 %v261_v8, %v260_v13  ;;  %v256_v25 = vmax.f32 %v223_v18, 0.0 }
  0xa7   :  { %v276_v55 = vpack.c.bf16 %v267_v52, %v266_v51 }
  0xa9   :  { %283 = vmatpush.bf16.msra.mxu1 %v276_v55  ;;  %v237_v57 = vpop.f32.mrf.mxu2 }
  0xaa   :  { %v238_v62 = vadd.f32 %v237_v57, %v107_v37  ;;  %v269_v37 = vpack.c.bf16 %v253_v34, %v252_v36 }
  0xab   :  { %v224_v11 = vpop.f32.mrf.mxu0 }
  0xac   :  { %v262_v4 = vmax.f32 %v238_v62, 0.0  ;;  %v225_v15 = vadd.f32 %v224_v11, %v82_v10 }
  0xad   :  { %284 = vmatpush.bf16.msra.mxu1 %v275_v59 }
  0xae   :  { %v257_v22 = vmax.f32 %v225_v15, 0.0 }
  0xb0   :  { %v271_v31 = vpack.c.bf16 %v257_v22, %v256_v25 }
  0xb1   :  { %v239_v63 = vpop.f32.mrf.mxu2 }
  0xb2   :  { %v240_v1 = vadd.f32 %v239_v63, %v112_v46 }
  0xb4   :  { %v263_v5 = vmax.f32 %v240_v1, 0.0 }
  0xb6   :  { %v274_v9 = vpack.c.bf16 %v263_v5, %v262_v4 }
  0xb8   :  { %285 = vmatpush.bf16.msra.mxu1 %v274_v9 }
  0xbc   :  { %286 = vmatpush.bf16.msra.mxu1 %v273_v16 }
  0xc0   :  { %287 = vmatpush.bf16.msra.mxu1 %v272_v23 }
  0xc4   :  { %288 = vmatpush.bf16.msra.mxu1 %v271_v31 }
  0xc8   :  { %289 = vmatpush.bf16.msra.mxu1 %v270_v35 }
  0xcc   :  { %290 = vmatpush.bf16.msra.mxu1 %v269_v37 }
  0xcf   :  { %291 = vmatmul.bf16.vlgmr.msra.gmra.mxu1 %v268_v38 }
 0x14c   :  { %v292_v40 = vpop.f32.mrf.mxu1 }
 0x14d   :  { %v293_v41 = vadd.f32 %v292_v40, %v281_v39 }
 0x14f   :  { %v297_v42 = vrot.slane %v293_v41, 1  ;;  %334 = vst [vmem:[%s539_s5] sm:$0xfc] %v293_v41 }
 0x151   :  { %v299_v28 = vmax.f32 %v293_v41, %v297_v42 }
 0x153   :  { %v300_v32 = vsub.f32 %v293_v41, %v299_v28  ;;  %v304_v43 = vrot.slane %v299_v28, 7 }
 0x154   :  { %v294_v44 = vpop.f32.mrf.mxu1 }
 0x155   :  { %v306_v45 = vsub.f32 %v293_v41, %v304_v43  ;;  %v301_v46 = vmul.f32 1.442695, %v300_v32 }
 0x157   :  { %v307_v47 = vmul.f32 1.442695, %v306_v45 }
 0x159   :  { %393 = vpow2.f32 %v307_v47 }
 0x15a   :  { %395 = vpow2.f32 %v301_v46 }
 0x15f   :  { %v394_v48 = vpop.eup %393 }
 0x160   :  { %v310_v49 = vrot.slane %v394_v48, 1  ;;  %v396_v50 = vpop.eup %395 }
 0x162   :  { %v312_v51 = vadd.f32 %v396_v50, %v310_v49 }
 0x164   :  { %397 = vrcp.f32 %v312_v51  ;;  %v324_v55 = vand.u32 2147483648, %v312_v51  ;;  %v322_v57 = vand.u32 2147483647, %v312_v51  ;;  %vm318_vm3 = vweird.f32 %v312_v51 }
 0x166   :  { %v325_v59 = vor.u32 1.1754944e-38, %v324_v55  ;;  %vm323_vm5 = vcmp.eq.f32.partialorder %v322_v57, 8.507059e+37 }
 0x16a   :  { %v398_v52 = vpop.eup %397 }
 0x16b   :  { %v314_v53 = vmul.f32 %v398_v52, %v312_v51  ;;  %vm319_vm2 = vweird.f32 %v398_v52 }
 0x16c   :  { %vm320_vm4 = vmor %vm318_vm3, %vm319_vm2 }
 0x16d   :  { %v315_v54 = vsub.f32 1.0, %v314_v53 }
 0x16f   :  { %v316_v56 = vmul.f32 %v398_v52, %v315_v54 }
 0x171   :  { %v317_v58 = vadd.f32 %v398_v52, %v316_v56 }
 0x173   :  { %v321_v60 = vsel %vm320_vm4, %v398_v52, %v317_v58 }
 0x174   :  { %v326_v61 = vsel %vm323_vm5, %v325_v59, %v321_v60 }
 0x175   :  { %v327_v62 = vmul.f32 %v396_v50, %v326_v61  ;;  %v330_v63 = vrot.slane %v326_v61, 7 }
 0x177   :  { %328 = vst [vmem:[%s539_s5] sm:$0x1] %v327_v62  ;;  %v332_v0 = vmul.f32 %v394_v48, %v330_v63 }
 0x179   :  { %333 = vst [vmem:[%s539_s5] sm:$0x2] %v332_v0 }

</bundles_post_ra>
